<compile_context>
chip_gen: v7x
topology: tpu7x:2x2x1
jax: 0.10.0
libtpu: 0.0.40
codegen_flags: <defaults>
</compile_context>

<pallas_src>
from collections import namedtuple

import numpy as np
import jax
import jax.numpy as jnp
from jax.experimental import pallas as pl
from jax.experimental.pallas import tpu as pltpu


_KP = 8  # lane width of the R / L / Gamma panels (cols 0 and 1 used, 2..7 zero)

Plan = namedtuple("Plan", "m2 m2r m2c tr ncores nsteps vmem_limit")


def _round_up(x, m):
    return ((x + m - 1) // m) * m


def _vmem_budgets():
    """(V double-buffer budget, vmem_limit_bytes), generation aware."""
    try:
        cap = int(pltpu.get_tpu_info().vmem_capacity_bytes)
    except Exception:
        cap = 64 << 20  # conservative (v7x-class) fallback if the query fails
    if cap >= (96 << 20):          # v5e / v6e: 128 MiB physical VMEM
        return 44 << 20, 96 << 20
    return 22 << 20, 48 << 20      # v7x: 64 MiB physical VMEM


def _make_plan(M, v_itemsize, row_tile_cap=None):
    """Choose the V row tile, the 2-TC row split and the padded V_mat shape."""
    m2 = M * M
    m2c = _round_up(m2, 128)                     # lane-dense V columns / R rows
    row_align = max(8, 32 // v_itemsize)         # 8 f32, 16 bf16, 32 int8/fp8
    v_budget, vmem_limit = _vmem_budgets()

    tr = (v_budget // (2 * m2c * v_itemsize) // row_align) * row_align
    tr = max(row_align, tr)
    tr = min(tr, _round_up(m2, row_align))       # never bigger than needed
    if row_tile_cap is not None:                 # test / tuning hook
        tr = max(row_align, min(tr, (row_tile_cap // row_align) * row_align))

    n_tiles = -(-m2 // tr)                       # ceil
    ncores = 2 if n_tiles >= 2 else 1            # 2-TC split on v7x; harmless elsewhere
    n_tiles = _round_up(n_tiles, ncores)
    nsteps = n_tiles // ncores
    m2r = n_tiles * tr                           # padded rows (extra L rows are zero)
    return Plan(m2=m2, m2r=m2r, m2c=m2c, tr=tr, ncores=ncores,
                nsteps=nsteps, vmem_limit=vmem_limit)


def _e2_kernel(v_ref, r_ref, l_ref, out_ref, acc_ref):
    """Grid = (ncores_split, nsteps); inner axis is the V row-tile reduction."""
    step = pl.program_id(1)

    @pl.when(step == 0)
    def _init():
        acc_ref[...] = jnp.zeros_like(acc_ref)

    # MXU: (TR, m2c) @ (m2c, 8) -> (TR, 8).  V tile is the only big DMA; the
    # bf16 -> f32 upcast happens in-registers so HBM traffic stays halved.
    gamma = jnp.dot(v_ref[...].astype(jnp.float32), r_ref[...],
                    preferred_element_type=jnp.float32)
    # Pure VPU FMA into the resident accumulator: no per-step cross-lane reduce.
    acc_ref[...] += l_ref[...] * gamma

    @pl.when(step == pl.num_programs(1) - 1)
    def _finish():
        # Single XLU reduce per core; broadcast so the whole (8,128) output
        # block is defined.  The wrapper reads element [0, 0] of each block.
        out_ref[...] = jnp.zeros_like(out_ref) + jnp.sum(acc_ref[...])


def hf_energy_pallas(h, V_mat, C_n, C_p, plan):
    """E = h . diag(rho_n + rho_p) + E2, with the O(M^4) E2 term in Pallas."""
    m2 = plan.m2

    # --- tiny O(M^2 * N) glue in plain XLA: densities + one-body energy ---
    cn = C_n.astype(jnp.float32)
    cp = C_p.astype(jnp.float32)
    rho_n = cn @ cn.T
    rho_p = cp @ cp.T
    e1 = jnp.dot(h.astype(jnp.float32), jnp.diagonal(rho_n + rho_p))

    # Column side of V_mat is (d,b) -> rho.flat; row side is (a,c) -> rho.T.flat.
    rn_col = rho_n.reshape(m2)
    rp_col = rho_p.reshape(m2)
    rn_row = rho_n.T.reshape(m2)
    rp_row = rho_p.T.reshape(m2)

    # R/L stay f32 (only V is low precision).  Only 8 lanes: no 126-lane zero
    # padding materialized in HBM.  Row zero-padding matches V_mat's padding.
    R = jnp.zeros((plan.m2c, _KP), jnp.float32)
    R = R.at[:m2, 0].set(rn_col).at[:m2, 1].set(rp_col)
    L = jnp.zeros((plan.m2r, _KP), jnp.float32)
    L = L.at[:m2, 0].set(0.5 * rn_row).at[:m2, 1].set(rn_row + 0.5 * rp_row)

    nsteps = plan.nsteps
    cost = pl.CostEstimate(
        flops=2 * plan.m2r * plan.m2c * _KP + 3 * plan.m2r * _KP,
        transcendentals=0,
        bytes_accessed=(plan.m2r * plan.m2c * V_mat.dtype.itemsize
                        + (plan.m2c + plan.m2r) * _KP * 4
                        + plan.ncores * 8 * 128 * 4),
    )

    partials = pl.pallas_call(
        _e2_kernel,
        out_shape=jax.ShapeDtypeStruct((plan.ncores * 8, 128), jnp.float32),
        grid=(plan.ncores, nsteps),
        in_specs=[
            # V_mat row tile: read exactly once, the dominant DMA.
            pl.BlockSpec((plan.tr, plan.m2c), lambda c, i: (c * nsteps + i, 0)),
            # R: tiny (m2c x 8) panel, constant index map -> fetched once, resident.
            pl.BlockSpec((plan.m2c, _KP), lambda c, i: (0, 0)),
            # L row tile, matches V rows.
            pl.BlockSpec((plan.tr, _KP), lambda c, i: (c * nsteps + i, 0)),
        ],
        out_specs=pl.BlockSpec((8, 128), lambda c, i: (c, 0)),   # per-core partial
        scratch_shapes=[pltpu.VMEM((plan.tr, _KP), jnp.float32)],
        compiler_params=pltpu.CompilerParams(
            dimension_semantics=("parallel", "arbitrary"),
            vmem_limit_bytes=plan.vmem_limit,
        ),
        cost_estimate=cost,
    )(V_mat, R, L)

    e2 = jnp.sum(partials[::8, 0])   # one scalar per core block
    return e1 + e2


class HFEnergyFunctionalNuclearPallas:
    """JAX/Pallas port of HFEnergyFunctionalNuclear (num_protons != 0 branch)."""

    def __init__(self, h_vec, V_tensor, num_neutrons, num_protons,
                 neutron_indices, proton_indices, key_an, key_ap,
                 v_dtype=jnp.bfloat16, row_tile_cap=None):
        self.h = h_vec
        self.M = int(h_vec.shape[0])
        self.Nn = num_neutrons
        self.Np = num_protons
        self.proton_idx = proton_indices
        # Dense V_tensor (equivalent to populating a zero (M,M,M,M) tensor from V_dict).
        self.V_tensor = V_tensor

        m2 = self.M * self.M
        itemsize = jnp.dtype(v_dtype).itemsize
        self.plan = _make_plan(self.M, itemsize, row_tile_cap)

        # Precompute ONCE:  V_mat[(a,c),(d,b)] = V[a,b,c,d], cast to bf16 by
        # default (halves the dominant HBM read on v5e/v6e/v7x; MXU accumulates
        # in f32), rows padded to a whole number of tiles (matching L rows are
        # zero -> mathematically inert), columns padded to a multiple of 128.
        v_mat = jnp.transpose(V_tensor, (0, 2, 3, 1)).reshape(m2, m2).astype(v_dtype)
        self.V_mat = jnp.pad(
            v_mat, ((0, self.plan.m2r - m2), (0, self.plan.m2c - m2)))
        # TODO(synk): optional fp8 V_mat with per-row scales folded into L for
        # v7x — needs an explicit accuracy gate, so not enabled by default.

        # Deterministic parameter init (torch.randn analogue).
        self.A_n = jax.random.normal(key_an, (self.proton_idx, self.Nn), dtype=h_vec.dtype)
        self.A_p = jax.random.normal(key_ap, (self.proton_idx, self.Np), dtype=h_vec.dtype)

        plan = self.plan
        self._energy = jax.jit(
            lambda V, h, cn, cp: hf_energy_pallas(h, V, cn, cp, plan))

    def forward(self):
        # TODO(synk): torch.linalg.qr has no Pallas primitive; jnp.linalg.qr is
        # used (energy is invariant to QR column-sign ambiguity since rho = Q Q^T).
        C_n_local, _ = jnp.linalg.qr(self.A_n)
        C_p_local, _ = jnp.linalg.qr(self.A_p)
        C_n = jnp.zeros((self.M, self.Nn), dtype=self.h.dtype)
        C_n = C_n.at[: self.proton_idx, :].set(C_n_local)
        # NOTE: as in the PyTorch original, this scatter requires
        # M - proton_idx == proton_idx (A_p has proton_idx rows).
        C_p = jnp.zeros((self.M, self.Np), dtype=self.h.dtype)
        C_p = C_p.at[self.proton_idx :, :].set(C_p_local)
        self.C_n = C_n
        self.C_p = C_p
        # Hot path: the O(M^4) two-body contraction in Pallas (MXU matmul form).
        return self._energy(self.V_mat, self.h, C_n, C_p)


def reference_energy(h, V, C_n, C_p):
    """Plain numpy float64 reference mirroring the PyTorch forward."""
    h = np.asarray(h, dtype=np.float64)
    V = np.asarray(V, dtype=np.float64)
    C_n = np.asarray(C_n, dtype=np.float64)
    C_p = np.asarray(C_p, dtype=np.float64)
    rho_n = C_n @ C_n.T
    rho_p = C_p @ C_p.T
    E1 = np.dot(h, np.diagonal(rho_n + rho_p))
    E2 = (0.5 * np.einsum('abcd,ca,db->', V, rho_n, rho_n)
          + 0.5 * np.einsum('abcd,ca,db->', V, rho_p, rho_p)
          + np.einsum('abcd,ca,db->', V, rho_n, rho_p))
    return E1 + E2


if __name__ == "__main__":
    def run_case(M, proton_idx, Nn, Np, v_dtype, row_tile_cap, rtol, atol):
        key = jax.random.PRNGKey(0)
        k_h, k_v, k_an, k_ap = jax.random.split(key, 4)
        h_vec = jax.random.normal(k_h, (M,), dtype=jnp.float32)
        V_tensor = jax.random.normal(k_v, (M, M, M, M), dtype=jnp.float32)
        model = HFEnergyFunctionalNuclearPallas(
            h_vec, V_tensor,
            num_neutrons=Nn, num_protons=Np,
            neutron_indices=None, proton_indices=proton_idx,
            key_an=k_an, key_ap=k_ap,
            v_dtype=v_dtype, row_tile_cap=row_tile_cap)
        energy = jax.block_until_ready(model.forward())
        ref = reference_energy(h_vec, V_tensor, model.C_n, model.C_p)
        assert np.isfinite(float(energy))
        np.testing.assert_allclose(float(energy), float(ref), rtol=rtol, atol=atol)

    # 1) Default config: bf16 V_mat (halved HBM traffic), single row tile at M=16.
    run_case(16, 8, 3, 2, jnp.bfloat16, None, rtol=5e-2, atol=5e-2)
    # 2) f32 V with a forced small row tile -> exercises the (2, nsteps) grid
    #    (2-way "parallel" row split), the resident accumulator and row padding.
    run_case(16, 8, 3, 2, jnp.float32, 64, rtol=1e-3, atol=1e-3)
    # 3) M=12 (m2=144, not a multiple of 128) -> exercises column zero-padding.
    run_case(12, 6, 2, 2, jnp.float32, None, rtol=1e-3, atol=1e-3)

    print("KERNEL_OK")
</pallas_src>

<mosaic_0001>
module attributes {stable_mosaic.version = 11 : i64} {
  func.func @_e2_kernel(%arg0: i32, %arg1: i32, %arg2: memref<256x256xbf16, #tpu.memory_space<vmem>>, %arg3: memref<256x8xf32, #tpu.memory_space<vmem>>, %arg4: memref<256x8xf32, #tpu.memory_space<vmem>>, %arg5: memref<8x128xf32, #tpu.memory_space<vmem>>, %arg6: memref<256x8xf32, #tpu.memory_space<vmem>>) attributes {dimension_semantics = [#tpu.dimension_semantics<parallel>, #tpu.dimension_semantics<arbitrary>], iteration_bounds = array<i64: 1, 1>, scalar_prefetch = 0 : i64, scratch_operands = 1 : i64, tpu.core_type = #tpu.core_type<tc>, window_params = [{transform_indices = @transform_0, window_bounds = array<i64: 256, 256>}, {pipeline_mode = #tpu.pipeline_mode<synchronous>, transform_indices = @transform_1, window_bounds = array<i64: 256, 8>}, {transform_indices = @transform_2, window_bounds = array<i64: 256, 8>}, {transform_indices = @transform_3, window_bounds = array<i64: 8, 128>}]} {
    %c0_i32 = arith.constant 0 : i32
    %0 = arith.cmpi eq, %arg1, %c0_i32 : i32
    %1 = arith.extui %0 : i1 to i32
    %c0_i32_0 = arith.constant 0 : i32
    %2 = arith.cmpi ne, %1, %c0_i32_0 : i32
    scf.if %2 {
      %cst_12 = arith.constant 0.000000e+00 : f32
      %15 = vector.broadcast %cst_12 : f32 to vector<256x8xf32>
      %c0_13 = arith.constant 0 : index
      %c0_14 = arith.constant 0 : index
      %16 = vector.load %arg6[%c0_13, %c0_14] : memref<256x8xf32, #tpu.memory_space<vmem>>, vector<256x8xf32>
      tpu.vector_store %arg6[%c0_13, %c0_14], %15 {strides = array<i32>} : memref<256x8xf32, #tpu.memory_space<vmem>>, vector<256x8xf32>,
    } else {
    }
    %c0 = arith.constant 0 : index
    %c0_1 = arith.constant 0 : index
    %3 = vector.load %arg2[%c0, %c0_1] : memref<256x256xbf16, #tpu.memory_space<vmem>>, vector<256x256xbf16>
    %4 = arith.extf %3 : vector<256x256xbf16> to vector<256x256xf32>
    %c0_2 = arith.constant 0 : index
    %c0_3 = arith.constant 0 : index
    %5 = vector.load %arg3[%c0_2, %c0_3] : memref<256x8xf32, #tpu.memory_space<vmem>>, vector<256x8xf32>
    %cst = arith.constant dense<0.000000e+00> : vector<256x8xf32>
    %6 = tpu.matmul %4, %5, %cst {dimension_numbers = #tpu.dot_dimension_numbers<[1], [0], [0], [1], [0, 0, 1, 1], [], []>} : vector<256x256xf32>, vector<256x8xf32>, vector<256x8xf32> -> vector<256x8xf32>
    %c0_4 = arith.constant 0 : index
    %c0_5 = arith.constant 0 : index
    %7 = vector.load %arg6[%c0_4, %c0_5] : memref<256x8xf32, #tpu.memory_space<vmem>>, vector<256x8xf32>
    %c0_6 = arith.constant 0 : index
    %c0_7 = arith.constant 0 : index
    %8 = vector.load %arg4[%c0_6, %c0_7] : memref<256x8xf32, #tpu.memory_space<vmem>>, vector<256x8xf32>
    %9 = arith.mulf %8, %6 : vector<256x8xf32>
    %10 = arith.addf %7, %9 : vector<256x8xf32>
    %c0_8 = arith.constant 0 : index
    %c0_9 = arith.constant 0 : index
    %11 = vector.load %arg6[%c0_8, %c0_9] : memref<256x8xf32, #tpu.memory_space<vmem>>, vector<256x8xf32>
    tpu.vector_store %arg6[%c0_8, %c0_9], %10 {strides = array<i32>} : memref<256x8xf32, #tpu.memory_space<vmem>>, vector<256x8xf32>,
    %c0_i32_10 = arith.constant 0 : i32
    %12 = arith.cmpi eq, %arg1, %c0_i32_10 : i32
    %13 = arith.extui %12 : i1 to i32
    %c0_i32_11 = arith.constant 0 : i32
    %14 = arith.cmpi ne, %13, %c0_i32_11 : i32
    scf.if %14 {
      %cst_12 = arith.constant 0.000000e+00 : f32
      %15 = vector.broadcast %cst_12 : f32 to vector<8x128xf32>
      %c0_13 = arith.constant 0 : index
      %c0_14 = arith.constant 0 : index
      %16 = vector.load %arg6[%c0_13, %c0_14] : memref<256x8xf32, #tpu.memory_space<vmem>>, vector<256x8xf32>
      %17 = vector.shape_cast %16 : vector<256x8xf32> to vector<1x256x8xf32>
      %cst_15 = arith.constant dense<0.000000e+00> : vector<1xf32>
      %18 = vector.multi_reduction <add>, %17, %cst_15 [1, 2] : vector<1x256x8xf32> to vector<1xf32>
      %19 = vector.shape_cast %18 : vector<1xf32> to vector<1x1x1xf32>
      %20 = vector.extract %19[0, 0, 0] : f32 from vector<1x1x1xf32>
      %21 = vector.broadcast %20 : f32 to vector<8x128xf32>
      %22 = arith.addf %15, %21 : vector<8x128xf32>
      %c0_16 = arith.constant 0 : index
      %c0_17 = arith.constant 0 : index
      %23 = vector.load %arg5[%c0_16, %c0_17] : memref<8x128xf32, #tpu.memory_space<vmem>>, vector<8x128xf32>
      tpu.vector_store %arg5[%c0_16, %c0_17], %22 {strides = array<i32>} : memref<8x128xf32, #tpu.memory_space<vmem>>, vector<8x128xf32>,
    } else {
    }
    return
  }
  func.func @transform_0(%arg0: i32, %arg1: i32) -> (i32, i32) {
    %c1_i32 = arith.constant 1 : i32
    %0 = arith.muli %arg0, %c1_i32 : i32
    %1 = arith.addi %0, %arg1 : i32
    %c0_i32 = arith.constant 0 : i32
    %c0_i32_0 = arith.constant 0 : i32
    return %1, %c0_i32 : i32, i32
  }
  func.func @transform_1(%arg0: i32, %arg1: i32) -> (i32, i32) {
    %c0_i32 = arith.constant 0 : i32
    %c0_i32_0 = arith.constant 0 : i32
    %c0_i32_1 = arith.constant 0 : i32
    return %c0_i32, %c0_i32_0 : i32, i32
  }
  func.func @transform_2(%arg0: i32, %arg1: i32) -> (i32, i32) {
    %c1_i32 = arith.constant 1 : i32
    %0 = arith.muli %arg0, %c1_i32 : i32
    %1 = arith.addi %0, %arg1 : i32
    %c0_i32 = arith.constant 0 : i32
    %c0_i32_0 = arith.constant 0 : i32
    return %1, %c0_i32 : i32, i32
  }
  func.func @transform_3(%arg0: i32, %arg1: i32) -> (i32, i32) {
    %c0_i32 = arith.constant 0 : i32
    %c0_i32_0 = arith.constant 0 : i32
    return %arg0, %c0_i32 : i32, i32
  }
}

</mosaic_0001>

<bundles_post_ra>
// kernel: _lambda_.1
= control target key start
LH: loop header
LB: loop body
LE: loop exit
PB: predicated region body
PF: predicated region fallthrough
CT: control target
= control target key end

     0   :  { %vm65_vm0 = vcmask 64512   ;;  %v822_v0 = vmov 0.0|0.0   ;;  %v823_v4 = vmov 0.0   ;;  %s1271_s1 = inlined_call_operand.vmem [shape: f32[256,8], index: 1, kind: input, shape index: {}]   ;;  %s1272_s0 = inlined_call_operand.vmem [shape: bf16[256,256], index: 0, kind: input, shape index: {}]   ;;  %s1273_s2 = inlined_call_operand.vmem [shape: f32[256,8], index: 2, kind: input, shape index: {}]   ;;  %s1274_s3 = inlined_call_operand.vmem [shape: f32[8,128], index: 3, kind: output, shape index: {}]  }
   0x1   :  { %738 = vmatprep.subr.bf16.mxu0 %v822_v0  ;;  %v194_v1 = vld [vmem:[%s1271_s1] sm:$0xff]  ;;  %v195_v2 = vld [vmem:[%s1271_s1 + $0x8] sm:$0xff]  ;;  %v196_v3 = vld [vmem:[%s1271_s1 + $0x10] sm:$0xff]  ;;  %786 = vmatprep.subr.bf16.mxu1 %v822_v0  ;;  %66 = vst.msk [vmem:[#allocation2] sm:$0xff] %vm65_vm0, %v823_v4 }
   0x2   :  { %67 = vst.msk [vmem:[#allocation2 + $0x8] sm:$0xff] %vm65_vm0, %v823_v4  ;;  %68 = vst.msk [vmem:[#allocation2 + $0x10] sm:$0xff] %vm65_vm0, %v823_v4  ;;  %v739_v5 = vpack.c.bf16 %v195_v2, %v194_v1  ;;  %v197_v6 = vld [vmem:[%s1271_s1 + $0x18] sm:$0xff]  ;;  %v198_v8 = vld [vmem:[%s1271_s1 + $0x20] sm:$0xff] }
   0x3   :  { %69 = vst.msk [vmem:[#allocation2 + $0x18] sm:$0xff] %vm65_vm0, %v823_v4  ;;  %70 = vst.msk [vmem:[#allocation2 + $0x20] sm:$0xff] %vm65_vm0, %v823_v4  ;;  %v742_v7 = vpack.c.bf16 %v197_v6, %v196_v3  ;;  %v199_v9 = vld [vmem:[%s1271_s1 + $0x28] sm:$0xff]  ;;  %v200_v11 = vld [vmem:[%s1271_s1 + $0x30] sm:$0xff] }
   0x4   :  { %71 = vst.msk [vmem:[#allocation2 + $0x28] sm:$0xff] %vm65_vm0, %v823_v4  ;;  %72 = vst.msk [vmem:[#allocation2 + $0x30] sm:$0xff] %vm65_vm0, %v823_v4  ;;  %740 = vmatpush1.bf16.msra.mxu0 %v739_v5  ;;  %802 = vmatpush1.bf16.msra.mxu1 %v739_v5  ;;  %v745_v10 = vpack.c.bf16 %v199_v9, %v198_v8  ;;  %v201_v12 = vld [vmem:[%s1271_s1 + $0x38] sm:$0xff]  ;;  %v909_v13 = vld [vmem:[%s1272_s0] sm:$0xff] }
   0x5   :  { %73 = vst.msk [vmem:[#allocation2 + $0x38] sm:$0xff] %vm65_vm0, %v823_v4  ;;  %74 = vst.msk [vmem:[#allocation2 + $0x40] sm:$0xff] %vm65_vm0, %v823_v4  ;;  %741 = vmatprep.subr.bf16.mxu0 %v822_v0  ;;  %787 = vmatprep.subr.bf16.mxu1 %v822_v0  ;;  %v748_v14 = vpack.c.bf16 %v201_v12, %v200_v11  ;;  %v131_v15 = vunpack.c.h.bf16 %v909_v13  ;;  %v202_v16 = vld [vmem:[%s1271_s1 + $0x40] sm:$0xff]  ;;  %v203_v17 = vld [vmem:[%s1271_s1 + $0x48] sm:$0xff]  ;;  %v130_v56 = vunpack.c.l.bf16 %v909_v13 }
   0x6   :  { %75 = vst.msk [vmem:[#allocation2 + $0x48] sm:$0xff] %vm65_vm0, %v823_v4  ;;  %76 = vst.msk [vmem:[#allocation2 + $0x50] sm:$0xff] %vm65_vm0, %v823_v4  ;;  %v923_v18 = vld [vmem:[%s1272_s0 + $0x80] sm:$0xff]  ;;  %v751_v19 = vpack.c.bf16 %v203_v17, %v202_v16  ;;  %v204_v21 = vld [vmem:[%s1271_s1 + $0x50] sm:$0xff] }
   0x7   :  { %77 = vst.msk [vmem:[#allocation2 + $0x58] sm:$0xff] %vm65_vm0, %v823_v4  ;;  %78 = vst.msk [vmem:[#allocation2 + $0x60] sm:$0xff] %vm65_vm0, %v823_v4  ;;  %290 = vmatprep.mubr.f32.mxu0 %v131_v15  ;;  %v163_v20 = vunpack.c.h.bf16 %v923_v18  ;;  %v205_v22 = vld [vmem:[%s1271_s1 + $0x58] sm:$0xff]  ;;  %v206_v24 = vld [vmem:[%s1271_s1 + $0x60] sm:$0xff]  ;;  %v162_v57 = vunpack.c.l.bf16 %v923_v18 }
   0x8   :  { %79 = vst.msk [vmem:[#allocation2 + $0x68] sm:$0xff] %vm65_vm0, %v823_v4  ;;  %80 = vst.msk [vmem:[#allocation2 + $0x70] sm:$0xff] %vm65_vm0, %v823_v4  ;;  %743 = vmatpush1.bf16.msra.mxu0 %v742_v7  ;;  %803 = vmatpush1.bf16.msra.mxu1 %v742_v7  ;;  %v754_v23 = vpack.c.bf16 %v205_v22, %v204_v21  ;;  %v207_v25 = vld [vmem:[%s1271_s1 + $0x68] sm:$0xff]  ;;  %v208_v27 = vld [vmem:[%s1271_s1 + $0x70] sm:$0xff] }
   0x9   :  { %81 = vst.msk [vmem:[#allocation2 + $0x78] sm:$0xff] %vm65_vm0, %v823_v4  ;;  %82 = vst.msk [vmem:[#allocation2 + $0x80] sm:$0xff] %vm65_vm0, %v823_v4  ;;  %744 = vmatprep.subr.bf16.mxu0 %v822_v0  ;;  %788 = vmatprep.subr.bf16.mxu1 %v822_v0  ;;  %v757_v26 = vpack.c.bf16 %v207_v25, %v206_v24  ;;  %v209_v28 = vld [vmem:[%s1271_s1 + $0x78] sm:$0xff]  ;;  %v210_v30 = vld [vmem:[%s1271_s1 + $0x80] sm:$0xff] }
   0xa   :  { %83 = vst.msk [vmem:[#allocation2 + $0x88] sm:$0xff] %vm65_vm0, %v823_v4  ;;  %84 = vst.msk [vmem:[#allocation2 + $0x90] sm:$0xff] %vm65_vm0, %v823_v4  ;;  %370 = vmatprep.mubr.f32.mxu1 %v163_v20  ;;  %v760_v29 = vpack.c.bf16 %v209_v28, %v208_v27  ;;  %v211_v31 = vld [vmem:[%s1271_s1 + $0x88] sm:$0xff]  ;;  %v212_v33 = vld [vmem:[%s1271_s1 + $0x90] sm:$0xff] }
   0xb   :  { %85 = vst.msk [vmem:[#allocation2 + $0x98] sm:$0xff] %vm65_vm0, %v823_v4  ;;  %86 = vst.msk [vmem:[#allocation2 + $0xa0] sm:$0xff] %vm65_vm0, %v823_v4  ;;  %v763_v32 = vpack.c.bf16 %v211_v31, %v210_v30  ;;  %v213_v34 = vld [vmem:[%s1271_s1 + $0x98] sm:$0xff]  ;;  %v214_v36 = vld [vmem:[%s1271_s1 + $0xa0] sm:$0xff] }
   0xc   :  { %87 = vst.msk [vmem:[#allocation2 + $0xa8] sm:$0xff] %vm65_vm0, %v823_v4  ;;  %88 = vst.msk [vmem:[#allocation2 + $0xb0] sm:$0xff] %vm65_vm0, %v823_v4  ;;  %746 = vmatpush1.bf16.msra.mxu0 %v745_v10  ;;  %804 = vmatpush1.bf16.msra.mxu1 %v745_v10  ;;  %v766_v35 = vpack.c.bf16 %v213_v34, %v212_v33  ;;  %v215_v37 = vld [vmem:[%s1271_s1 + $0xa8] sm:$0xff]  ;;  %v216_v39 = vld [vmem:[%s1271_s1 + $0xb0] sm:$0xff] }
   0xd   :  { %89 = vst.msk [vmem:[#allocation2 + $0xb8] sm:$0xff] %vm65_vm0, %v823_v4  ;;  %90 = vst.msk [vmem:[#allocation2 + $0xc0] sm:$0xff] %vm65_vm0, %v823_v4  ;;  %747 = vmatprep.subr.bf16.mxu0 %v822_v0  ;;  %789 = vmatprep.subr.bf16.mxu1 %v822_v0  ;;  %v769_v38 = vpack.c.bf16 %v215_v37, %v214_v36  ;;  %v217_v40 = vld [vmem:[%s1271_s1 + $0xb8] sm:$0xff]  ;;  %v218_v42 = vld [vmem:[%s1271_s1 + $0xc0] sm:$0xff] }
   0xe   :  { %91 = vst.msk [vmem:[#allocation2 + $0xc8] sm:$0xff] %vm65_vm0, %v823_v4  ;;  %92 = vst.msk [vmem:[#allocation2 + $0xd0] sm:$0xff] %vm65_vm0, %v823_v4  ;;  %v772_v41 = vpack.c.bf16 %v217_v40, %v216_v39  ;;  %v219_v43 = vld [vmem:[%s1271_s1 + $0xc8] sm:$0xff]  ;;  %v220_v45 = vld [vmem:[%s1271_s1 + $0xd0] sm:$0xff] }
   0xf   :  { %93 = vst.msk [vmem:[#allocation2 + $0xd8] sm:$0xff] %vm65_vm0, %v823_v4  ;;  %94 = vst.msk [vmem:[#allocation2 + $0xe0] sm:$0xff] %vm65_vm0, %v823_v4  ;;  %v775_v44 = vpack.c.bf16 %v219_v43, %v218_v42  ;;  %v221_v46 = vld [vmem:[%s1271_s1 + $0xd8] sm:$0xff]  ;;  %v222_v48 = vld [vmem:[%s1271_s1 + $0xe0] sm:$0xff] }
  0x10   :  { %95 = vst.msk [vmem:[#allocation2 + $0xe8] sm:$0xff] %vm65_vm0, %v823_v4  ;;  %96 = vst.msk [vmem:[#allocation2 + $0xf0] sm:$0xff] %vm65_vm0, %v823_v4  ;;  %749 = vmatpush1.bf16.msra.mxu0 %v748_v14  ;;  %805 = vmatpush1.bf16.msra.mxu1 %v748_v14  ;;  %v778_v47 = vpack.c.bf16 %v221_v46, %v220_v45  ;;  %v223_v49 = vld [vmem:[%s1271_s1 + $0xe8] sm:$0xff]  ;;  %v224_v51 = vld [vmem:[%s1271_s1 + $0xf0] sm:$0xff] }
  0x11   :  { %97 = vst.msk [vmem:[#allocation2 + $0xf8] sm:$0xff] %vm65_vm0, %v823_v4  ;;  %750 = vmatprep.subr.bf16.mxu0 %v822_v0  ;;  %790 = vmatprep.subr.bf16.mxu1 %v822_v0  ;;  %v781_v50 = vpack.c.bf16 %v223_v49, %v222_v48  ;;  %v225_v52 = vld [vmem:[%s1271_s1 + $0xf8] sm:$0xff]  ;;  %v99_v54 = vld [vmem:[%s1272_s0 + $0x8] sm:$0xff]  ;;  %v100_v60 = vld [vmem:[%s1272_s0 + $0x10] sm:$0xff] }
  0x12   :  { %v784_v53 = vpack.c.bf16 %v225_v52, %v224_v51  ;;  %v115_v55 = vld [vmem:[%s1272_s0 + $0x88] sm:$0xff]  ;;  %v133_v58 = vunpack.c.h.bf16 %v99_v54  ;;  %v116_v61 = vld [vmem:[%s1272_s0 + $0x90] sm:$0xff]  ;;  %v132_v62 = vunpack.c.l.bf16 %v99_v54  ;;  %v101_v2 = vld [vmem:[%s1272_s0 + $0x18] sm:$0xff]  ;;  %v134_v4 = vunpack.c.l.bf16 %v100_v60 }
  0x13   :  { %v165_v59 = vunpack.c.h.bf16 %v115_v55  ;;  %v164_v63 = vunpack.c.l.bf16 %v115_v55  ;;  %v167_v1 = vunpack.c.h.bf16 %v116_v61  ;;  %v117_v3 = vld [vmem:[%s1272_s0 + $0x98] sm:$0xff]  ;;  %v166_v5 = vunpack.c.l.bf16 %v116_v61  ;;  %v102_v8 = vld [vmem:[%s1272_s0 + $0x20] sm:$0xff]  ;;  %v103_v14 = vld [vmem:[%s1272_s0 + $0x28] sm:$0xff] }
  0x14   :  { %752 = vmatpush1.bf16.msra.mxu0 %v751_v19  ;;  %806 = vmatpush1.bf16.msra.mxu1 %v751_v19  ;;  %v137_v6 = vunpack.c.h.bf16 %v101_v2  ;;  %v169_v7 = vunpack.c.h.bf16 %v117_v3  ;;  %v118_v9 = vld [vmem:[%s1272_s0 + $0xa0] sm:$0xff]  ;;  %v136_v10 = vunpack.c.l.bf16 %v101_v2  ;;  %v168_v11 = vunpack.c.l.bf16 %v117_v3  ;;  %v119_v15 = vld [vmem:[%s1272_s0 + $0xa8] sm:$0xff]  ;;  %v104_v20 = vld [vmem:[%s1272_s0 + $0x30] sm:$0xff] }
  0x15   :  { %753 = vmatprep.subr.bf16.mxu0 %v822_v0  ;;  %791 = vmatprep.subr.bf16.mxu1 %v822_v0  ;;  %v139_v12 = vunpack.c.h.bf16 %v102_v8  ;;  %v171_v13 = vunpack.c.h.bf16 %v118_v9  ;;  %v138_v16 = vunpack.c.l.bf16 %v102_v8  ;;  %v170_v17 = vunpack.c.l.bf16 %v118_v9  ;;  %v120_v21 = vld [vmem:[%s1272_s0 + $0xb0] sm:$0xff]  ;;  %v121_v27 = vld [vmem:[%s1272_s0 + $0xb8] sm:$0xff]  ;;  %v122_v33 = vld [vmem:[%s1272_s0 + $0xc0] sm:$0xff] }
  0x16   :  { %v141_v18 = vunpack.c.h.bf16 %v103_v14  ;;  %v173_v19 = vunpack.c.h.bf16 %v119_v15  ;;  %v140_v22 = vunpack.c.l.bf16 %v103_v14  ;;  %v143_v24 = vunpack.c.h.bf16 %v104_v20  ;;  %v123_v39 = vld [vmem:[%s1272_s0 + $0xc8] sm:$0xff]  ;;  %v124_v45 = vld [vmem:[%s1272_s0 + $0xd0] sm:$0xff]  ;;  %v125_v51 = vld [vmem:[%s1272_s0 + $0xd8] sm:$0xff] }
  0x17   :  { %v175_v25 = vunpack.c.h.bf16 %v120_v21  ;;  %v142_v28 = vunpack.c.l.bf16 %v104_v20  ;;  %v177_v31 = vunpack.c.h.bf16 %v121_v27  ;;  %v179_v37 = vunpack.c.h.bf16 %v122_v33 }
  0x18   :  { %755 = vmatpush1.bf16.msra.mxu0 %v754_v23  ;;  %807 = vmatpush1.bf16.msra.mxu1 %v754_v23  ;;  %v172_v23 = vunpack.c.l.bf16 %v119_v15  ;;  %v181_v43 = vunpack.c.h.bf16 %v123_v39  ;;  %v183_v49 = vunpack.c.h.bf16 %v124_v45  ;;  %v185_v55 = vunpack.c.h.bf16 %v125_v51 }
  0x19   :  { %756 = vmatprep.subr.bf16.mxu0 %v822_v0  ;;  %792 = vmatprep.subr.bf16.mxu1 %v822_v0 }
  0x1c   :  { %758 = vmatpush1.bf16.msra.mxu0 %v757_v26  ;;  %808 = vmatpush1.bf16.msra.mxu1 %v757_v26  ;;  %v105_v26 = vld [vmem:[%s1272_s0 + $0x38] sm:$0xff] }
  0x1d   :  { %759 = vmatprep.subr.bf16.mxu0 %v822_v0  ;;  %793 = vmatprep.subr.bf16.mxu1 %v822_v0  ;;  %v145_v30 = vunpack.c.h.bf16 %v105_v26  ;;  %v144_v34 = vunpack.c.l.bf16 %v105_v26 }
  0x20   :  { %761 = vmatpush1.bf16.msra.mxu0 %v760_v29  ;;  %809 = vmatpush1.bf16.msra.mxu1 %v760_v29  ;;  %v174_v29 = vunpack.c.l.bf16 %v120_v21  ;;  %v451_v21 = vld [vmem:[#allocation2] sm:$0xff] }
  0x21   :  { %762 = vmatprep.subr.bf16.mxu0 %v822_v0  ;;  %794 = vmatprep.subr.bf16.mxu1 %v822_v0 }
  0x24   :  { %764 = vmatpush1.bf16.msra.mxu0 %v763_v32  ;;  %810 = vmatpush1.bf16.msra.mxu1 %v763_v32  ;;  %v106_v32 = vld [vmem:[%s1272_s0 + $0x40] sm:$0xff] }
  0x25   :  { %765 = vmatprep.subr.bf16.mxu0 %v822_v0  ;;  %795 = vmatprep.subr.bf16.mxu1 %v822_v0  ;;  %v147_v36 = vunpack.c.h.bf16 %v106_v32  ;;  %v146_v40 = vunpack.c.l.bf16 %v106_v32 }
  0x28   :  { %767 = vmatpush1.bf16.msra.mxu0 %v766_v35  ;;  %811 = vmatpush1.bf16.msra.mxu1 %v766_v35  ;;  %v176_v35 = vunpack.c.l.bf16 %v121_v27 }
  0x29   :  { %768 = vmatprep.subr.bf16.mxu0 %v822_v0  ;;  %796 = vmatprep.subr.bf16.mxu1 %v822_v0 }
  0x2c   :  { %770 = vmatpush1.bf16.msra.mxu0 %v769_v38  ;;  %812 = vmatpush1.bf16.msra.mxu1 %v769_v38  ;;  %v107_v38 = vld [vmem:[%s1272_s0 + $0x48] sm:$0xff] }
  0x2d   :  { %771 = vmatprep.subr.bf16.mxu0 %v822_v0  ;;  %797 = vmatprep.subr.bf16.mxu1 %v822_v0  ;;  %v149_v42 = vunpack.c.h.bf16 %v107_v38  ;;  %v148_v46 = vunpack.c.l.bf16 %v107_v38 }
  0x30   :  { %773 = vmatpush1.bf16.msra.mxu0 %v772_v41  ;;  %813 = vmatpush1.bf16.msra.mxu1 %v772_v41  ;;  %v178_v41 = vunpack.c.l.bf16 %v122_v33  ;;  %v452_v33 = vld [vmem:[#allocation2 + $0x8] sm:$0xff] }
  0x31   :  { %774 = vmatprep.subr.bf16.mxu0 %v822_v0  ;;  %798 = vmatprep.subr.bf16.mxu1 %v822_v0 }
  0x34   :  { %776 = vmatpush1.bf16.msra.mxu0 %v775_v44  ;;  %814 = vmatpush1.bf16.msra.mxu1 %v775_v44  ;;  %v108_v44 = vld [vmem:[%s1272_s0 + $0x50] sm:$0xff] }
  0x35   :  { %777 = vmatprep.subr.bf16.mxu0 %v822_v0  ;;  %799 = vmatprep.subr.bf16.mxu1 %v822_v0  ;;  %v151_v48 = vunpack.c.h.bf16 %v108_v44  ;;  %v150_v52 = vunpack.c.l.bf16 %v108_v44 }
  0x38   :  { %779 = vmatpush1.bf16.msra.mxu0 %v778_v47  ;;  %815 = vmatpush1.bf16.msra.mxu1 %v778_v47  ;;  %v180_v47 = vunpack.c.l.bf16 %v123_v39 }
  0x39   :  { %780 = vmatprep.subr.bf16.mxu0 %v822_v0  ;;  %800 = vmatprep.subr.bf16.mxu1 %v822_v0 }
  0x3c   :  { %782 = vmatpush1.bf16.msra.mxu0 %v781_v50  ;;  %816 = vmatpush1.bf16.msra.mxu1 %v781_v50  ;;  %v109_v50 = vld [vmem:[%s1272_s0 + $0x58] sm:$0xff] }
  0x3d   :  { %783 = vmatprep.subr.bf16.mxu0 %v822_v0  ;;  %801 = vmatprep.subr.bf16.mxu1 %v822_v0  ;;  %v135_v0 = vunpack.c.h.bf16 %v100_v60  ;;  %v153_v54 = vunpack.c.h.bf16 %v109_v50 }
  0x40   :  { %785 = vmatpush1.bf16.msra.mxu0 %v784_v53  ;;  %817 = vmatpush1.bf16.msra.mxu1 %v784_v53  ;;  %v182_v53 = vunpack.c.l.bf16 %v124_v45  ;;  %v453_v45 = vld [vmem:[#allocation2 + $0x10] sm:$0xff] }
  0x43   :  { %291 = vmatmul.mubr.f32.vlgmr.msra.gmra.mrb[0].mxu0 %v130_v56  ;;  %371 = vmatmul.mubr.f32.vlgmr.msra.gmra.mrb[0].mxu1 %v162_v57  ;;  %v110_v56 = vld [vmem:[%s1272_s0 + $0x60] sm:$0xff] }
  0x44   :  { %295 = vmatprep.mubr.f32.mxu0 %v133_v58  ;;  %375 = vmatprep.mubr.f32.mxu1 %v165_v59  ;;  %v126_v57 = vld [vmem:[%s1272_s0 + $0xe0] sm:$0xff]  ;;  %v152_v58 = vunpack.c.l.bf16 %v109_v50  ;;  %v184_v59 = vunpack.c.l.bf16 %v125_v51  ;;  %v155_v60 = vunpack.c.h.bf16 %v110_v56 }
  0x45   :  { %v187_v61 = vunpack.c.h.bf16 %v126_v57 }
  0x47   :  { %296 = vmatmul.mubr.f32.gmra.mrb[2].mxu0 %v132_v62  ;;  %376 = vmatmul.mubr.f32.gmra.mrb[2].mxu1 %v164_v63  ;;  %v111_v62 = vld [vmem:[%s1272_s0 + $0x68] sm:$0xff] }
  0x48   :  { %300 = vmatprep.mubr.f32.mxu0 %v135_v0  ;;  %380 = vmatprep.mubr.f32.mxu1 %v167_v1  ;;  %v127_v63 = vld [vmem:[%s1272_s0 + $0xe8] sm:$0xff]  ;;  %v154_v0 = vunpack.c.l.bf16 %v110_v56  ;;  %v186_v1 = vunpack.c.l.bf16 %v126_v57  ;;  %v157_v2 = vunpack.c.h.bf16 %v111_v62  ;;  %v454_v57 = vld [vmem:[#allocation2 + $0x18] sm:$0xff] }
  0x49   :  { %v189_v3 = vunpack.c.h.bf16 %v127_v63 }
  0x4b   :  { %301 = vmatmul.mubr.f32.gmra.mrb[4].mxu0 %v134_v4  ;;  %381 = vmatmul.mubr.f32.gmra.mrb[4].mxu1 %v166_v5  ;;  %v112_v4 = vld [vmem:[%s1272_s0 + $0x70] sm:$0xff] }
  0x4c   :  { %305 = vmatprep.mubr.f32.mxu0 %v137_v6  ;;  %385 = vmatprep.mubr.f32.mxu1 %v169_v7  ;;  %v128_v5 = vld [vmem:[%s1272_s0 + $0xf0] sm:$0xff]  ;;  %v156_v6 = vunpack.c.l.bf16 %v111_v62  ;;  %v188_v7 = vunpack.c.l.bf16 %v127_v63  ;;  %v159_v8 = vunpack.c.h.bf16 %v112_v4 }
  0x4d   :  { %v191_v9 = vunpack.c.h.bf16 %v128_v5 }
  0x4f   :  { %306 = vmatmul.mubr.f32.gmra.mrb[6].mxu0 %v136_v10  ;;  %386 = vmatmul.mubr.f32.gmra.mrb[6].mxu1 %v168_v11  ;;  %v113_v10 = vld [vmem:[%s1272_s0 + $0x78] sm:$0xff] }
  0x50   :  { %310 = vmatprep.mubr.f32.mxu0 %v139_v12  ;;  %390 = vmatprep.mubr.f32.mxu1 %v171_v13  ;;  %v129_v11 = vld [vmem:[%s1272_s0 + $0xf8] sm:$0xff]  ;;  %v158_v12 = vunpack.c.l.bf16 %v112_v4  ;;  %v190_v13 = vunpack.c.l.bf16 %v128_v5  ;;  %v161_v14 = vunpack.c.h.bf16 %v113_v10  ;;  %v455_v5 = vld [vmem:[#allocation2 + $0x20] sm:$0xff] }
  0x51   :  { %v193_v15 = vunpack.c.h.bf16 %v129_v11 }
  0x53   :  { %311 = vmatmul.mubr.f32.gmra.mrb[8].mxu0 %v138_v16  ;;  %391 = vmatmul.mubr.f32.gmra.mrb[8].mxu1 %v170_v17  ;;  %v160_v16 = vunpack.c.l.bf16 %v113_v10  ;;  %v192_v17 = vunpack.c.l.bf16 %v129_v11 }
  0x54   :  { %315 = vmatprep.mubr.f32.mxu0 %v141_v18  ;;  %395 = vmatprep.mubr.f32.mxu1 %v173_v19  ;;  %v483_v18 = vld [vmem:[%s1273_s2] sm:$0xff] }
  0x55   :  { %v499_v19 = vld [vmem:[%s1273_s2 + $0x80] sm:$0xff] }
  0x57   :  { %316 = vmatmul.mubr.f32.gmra.mrb[10].mxu0 %v140_v22  ;;  %396 = vmatmul.mubr.f32.gmra.mrb[10].mxu1 %v172_v23  ;;  %v467_v23 = vld [vmem:[#allocation2 + $0x80] sm:$0xff] }
  0x58   :  { %320 = vmatprep.mubr.f32.mxu0 %v143_v24  ;;  %400 = vmatprep.mubr.f32.mxu1 %v175_v25 }
  0x5b   :  { %321 = vmatmul.mubr.f32.gmra.mrb[12].mxu0 %v142_v28  ;;  %401 = vmatmul.mubr.f32.gmra.mrb[12].mxu1 %v174_v29  ;;  %v484_v28 = vld [vmem:[%s1273_s2 + $0x8] sm:$0xff] }
  0x5c   :  { %325 = vmatprep.mubr.f32.mxu0 %v145_v30  ;;  %405 = vmatprep.mubr.f32.mxu1 %v177_v31  ;;  %v500_v29 = vld [vmem:[%s1273_s2 + $0x88] sm:$0xff] }
  0x5f   :  { %326 = vmatmul.mubr.f32.gmra.mrb[14].mxu0 %v144_v34  ;;  %406 = vmatmul.mubr.f32.gmra.mrb[14].mxu1 %v176_v35  ;;  %v468_v35 = vld [vmem:[#allocation2 + $0x88] sm:$0xff] }
  0x60   :  { %330 = vmatprep.mubr.f32.mxu0 %v147_v36  ;;  %410 = vmatprep.mubr.f32.mxu1 %v179_v37 }
  0x63   :  { %331 = vmatmul.mubr.f32.gmra.mrb[16].mxu0 %v146_v40  ;;  %411 = vmatmul.mubr.f32.gmra.mrb[16].mxu1 %v178_v41  ;;  %v485_v40 = vld [vmem:[%s1273_s2 + $0x10] sm:$0xff] }
  0x64   :  { %335 = vmatprep.mubr.f32.mxu0 %v149_v42  ;;  %415 = vmatprep.mubr.f32.mxu1 %v181_v43  ;;  %v501_v41 = vld [vmem:[%s1273_s2 + $0x90] sm:$0xff] }
  0x67   :  { %336 = vmatmul.mubr.f32.gmra.mrb[18].mxu0 %v148_v46  ;;  %416 = vmatmul.mubr.f32.gmra.mrb[18].mxu1 %v180_v47  ;;  %v469_v47 = vld [vmem:[#allocation2 + $0x90] sm:$0xff] }
  0x68   :  { %340 = vmatprep.mubr.f32.mxu0 %v151_v48  ;;  %420 = vmatprep.mubr.f32.mxu1 %v183_v49 }
  0x6b   :  { %341 = vmatmul.mubr.f32.gmra.mrb[20].mxu0 %v150_v52  ;;  %421 = vmatmul.mubr.f32.gmra.mrb[20].mxu1 %v182_v53  ;;  %v486_v52 = vld [vmem:[%s1273_s2 + $0x18] sm:$0xff] }
  0x6c   :  { %345 = vmatprep.mubr.f32.mxu0 %v153_v54  ;;  %425 = vmatprep.mubr.f32.mxu1 %v185_v55  ;;  %v502_v53 = vld [vmem:[%s1273_s2 + $0x98] sm:$0xff] }
  0x6f   :  { %346 = vmatmul.mubr.f32.gmra.mrb[22].mxu0 %v152_v58  ;;  %426 = vmatmul.mubr.f32.gmra.mrb[22].mxu1 %v184_v59  ;;  %v470_v59 = vld [vmem:[#allocation2 + $0x98] sm:$0xff] }
  0x70   :  { %350 = vmatprep.mubr.f32.mxu0 %v155_v60  ;;  %430 = vmatprep.mubr.f32.mxu1 %v187_v61 }
  0x73   :  { %351 = vmatmul.mubr.f32.gmra.mrb[24].mxu0 %v154_v0  ;;  %431 = vmatmul.mubr.f32.gmra.mrb[24].mxu1 %v186_v1  ;;  %v487_v0 = vld [vmem:[%s1273_s2 + $0x20] sm:$0xff] }
  0x74   :  { %355 = vmatprep.mubr.f32.mxu0 %v157_v2  ;;  %435 = vmatprep.mubr.f32.mxu1 %v189_v3  ;;  %v503_v1 = vld [vmem:[%s1273_s2 + $0xa0] sm:$0xff] }
  0x77   :  { %356 = vmatmul.mubr.f32.gmra.mrb[26].mxu0 %v156_v6  ;;  %436 = vmatmul.mubr.f32.gmra.mrb[26].mxu1 %v188_v7  ;;  %v471_v7 = vld [vmem:[#allocation2 + $0xa0] sm:$0xff] }
  0x78   :  { %360 = vmatprep.mubr.f32.mxu0 %v159_v8  ;;  %440 = vmatprep.mubr.f32.mxu1 %v191_v9 }
  0x7b   :  { %361 = vmatmul.mubr.f32.gmra.mrb[28].mxu0 %v158_v12  ;;  %441 = vmatmul.mubr.f32.gmra.mrb[28].mxu1 %v190_v13  ;;  %v488_v12 = vld [vmem:[%s1273_s2 + $0x28] sm:$0xff] }
  0x7c   :  { %365 = vmatprep.mubr.f32.mxu0 %v161_v14  ;;  %445 = vmatprep.mubr.f32.mxu1 %v193_v15  ;;  %v504_v13 = vld [vmem:[%s1273_s2 + $0xa8] sm:$0xff] }
  0x7f   :  { %366 = vmatmul.mubr.f32.gmra.mrb[30].mxu0 %v160_v16  ;;  %446 = vmatmul.mubr.f32.gmra.mrb[30].mxu1 %v192_v17  ;;  %v456_v17 = vld [vmem:[#allocation2 + $0x28] sm:$0xff] }
 0x116   :  { %v292_v20 = vpop.f32.mrb[0].mxu0  ;;  %v372_v22 = vpop.f32.mrb[0].mxu1 }
 0x117   :  { %v515_v24 = vmul.f32 %v483_v18, %v292_v20  ;;  %v294_v25 = vpop.f32.mrb[1].mxu0  ;;  %v531_v26 = vmul.f32 %v499_v19, %v372_v22  ;;  %v374_v27 = vpop.f32.mrb[1].mxu1  ;;  %v472_v19 = vld [vmem:[#allocation2 + $0xa8] sm:$0xff] }
 0x118   :  { %v505_v25 = vld [vmem:[%s1273_s2 + $0xb0] sm:$0xff] }
 0x119   :  { %v547_v30 = vadd.f32 %v515_v24, %v451_v21  ;;  %v563_v31 = vadd.f32 %v531_v26, %v467_v23  ;;  %v489_v24 = vld [vmem:[%s1273_s2 + $0x30] sm:$0xff] }
 0x11a   :  { %v297_v32 = vpop.f32.mrb[2].mxu0  ;;  %v377_v34 = vpop.f32.mrb[2].mxu1 }
 0x11b   :  { %580 = vst.msk [vmem:[#allocation2] sm:$0xff] %vm65_vm0, %v547_v30  ;;  %v516_v36 = vmul.f32 %v484_v28, %v297_v32  ;;  %v299_v37 = vpop.f32.mrb[3].mxu0  ;;  %596 = vst.msk [vmem:[#allocation2 + $0x80] sm:$0xff] %vm65_vm0, %v563_v31  ;;  %v532_v38 = vmul.f32 %v500_v29, %v377_v34  ;;  %v379_v39 = vpop.f32.mrb[3].mxu1  ;;  %v457_v29 = vld [vmem:[#allocation2 + $0x30] sm:$0xff] }
 0x11c   :  { %v473_v31 = vld [vmem:[#allocation2 + $0xb0] sm:$0xff]  ;;  %v506_v37 = vld [vmem:[%s1273_s2 + $0xb8] sm:$0xff] }
 0x11d   :  { %v548_v42 = vadd.f32 %v516_v36, %v452_v33  ;;  %v564_v43 = vadd.f32 %v532_v38, %v468_v35  ;;  %v490_v36 = vld [vmem:[%s1273_s2 + $0x38] sm:$0xff] }
 0x11e   :  { %v302_v44 = vpop.f32.mrb[4].mxu0  ;;  %v382_v46 = vpop.f32.mrb[4].mxu1 }
 0x11f   :  { %581 = vst.msk [vmem:[#allocation2 + $0x8] sm:$0xff] %vm65_vm0, %v548_v42  ;;  %v517_v48 = vmul.f32 %v485_v40, %v302_v44  ;;  %v304_v49 = vpop.f32.mrb[5].mxu0  ;;  %597 = vst.msk [vmem:[#allocation2 + $0x88] sm:$0xff] %vm65_vm0, %v564_v43  ;;  %v533_v50 = vmul.f32 %v501_v41, %v382_v46  ;;  %v384_v51 = vpop.f32.mrb[5].mxu1  ;;  %v458_v41 = vld [vmem:[#allocation2 + $0x38] sm:$0xff] }
 0x120   :  { %v474_v43 = vld [vmem:[#allocation2 + $0xb8] sm:$0xff]  ;;  %v507_v49 = vld [vmem:[%s1273_s2 + $0xc0] sm:$0xff] }
 0x121   :  { %v549_v54 = vadd.f32 %v517_v48, %v453_v45  ;;  %v565_v55 = vadd.f32 %v533_v50, %v469_v47  ;;  %v491_v48 = vld [vmem:[%s1273_s2 + $0x40] sm:$0xff] }
 0x122   :  { %v307_v56 = vpop.f32.mrb[6].mxu0  ;;  %v387_v58 = vpop.f32.mrb[6].mxu1 }
 0x123   :  { %582 = vst.msk [vmem:[#allocation2 + $0x10] sm:$0xff] %vm65_vm0, %v549_v54  ;;  %v518_v60 = vmul.f32 %v486_v52, %v307_v56  ;;  %v309_v61 = vpop.f32.mrb[7].mxu0  ;;  %598 = vst.msk [vmem:[#allocation2 + $0x90] sm:$0xff] %vm65_vm0, %v565_v55  ;;  %v534_v62 = vmul.f32 %v502_v53, %v387_v58  ;;  %v389_v63 = vpop.f32.mrb[7].mxu1  ;;  %v459_v53 = vld [vmem:[#allocation2 + $0x40] sm:$0xff] }
 0x124   :  { %v475_v55 = vld [vmem:[#allocation2 + $0xc0] sm:$0xff]  ;;  %v508_v61 = vld [vmem:[%s1273_s2 + $0xc8] sm:$0xff] }
 0x125   :  { %v550_v2 = vadd.f32 %v518_v60, %v454_v57  ;;  %v566_v3 = vadd.f32 %v534_v62, %v470_v59  ;;  %v492_v60 = vld [vmem:[%s1273_s2 + $0x48] sm:$0xff] }
 0x126   :  { %v312_v4 = vpop.f32.mrb[8].mxu0  ;;  %v392_v6 = vpop.f32.mrb[8].mxu1 }
 0x127   :  { %583 = vst.msk [vmem:[#allocation2 + $0x18] sm:$0xff] %vm65_vm0, %v550_v2  ;;  %v519_v8 = vmul.f32 %v487_v0, %v312_v4  ;;  %v314_v9 = vpop.f32.mrb[9].mxu0  ;;  %599 = vst.msk [vmem:[#allocation2 + $0x98] sm:$0xff] %vm65_vm0, %v566_v3  ;;  %v535_v10 = vmul.f32 %v503_v1, %v392_v6  ;;  %v394_v11 = vpop.f32.mrb[9].mxu1  ;;  %v460_v1 = vld [vmem:[#allocation2 + $0x48] sm:$0xff] }
 0x128   :  { %v476_v3 = vld [vmem:[#allocation2 + $0xc8] sm:$0xff]  ;;  %v509_v9 = vld [vmem:[%s1273_s2 + $0xd0] sm:$0xff] }
 0x129   :  { %v551_v14 = vadd.f32 %v519_v8, %v455_v5  ;;  %v567_v15 = vadd.f32 %v535_v10, %v471_v7  ;;  %v493_v8 = vld [vmem:[%s1273_s2 + $0x50] sm:$0xff] }
 0x12a   :  { %v317_v16 = vpop.f32.mrb[10].mxu0  ;;  %v397_v18 = vpop.f32.mrb[10].mxu1 }
 0x12b   :  { %584 = vst.msk [vmem:[#allocation2 + $0x20] sm:$0xff] %vm65_vm0, %v551_v14  ;;  %v520_v20 = vmul.f32 %v488_v12, %v317_v16  ;;  %v319_v21 = vpop.f32.mrb[11].mxu0  ;;  %600 = vst.msk [vmem:[#allocation2 + $0xa0] sm:$0xff] %vm65_vm0, %v567_v15  ;;  %v536_v22 = vmul.f32 %v504_v13, %v397_v18  ;;  %v399_v23 = vpop.f32.mrb[11].mxu1  ;;  %v616_v12 = vld [vmem:[#allocation2 + $0x8] sm:$0xff]  ;;  %v461_v14 = vld [vmem:[#allocation2 + $0x50] sm:$0xff] }
 0x12c   :  { %v477_v16 = vld [vmem:[#allocation2 + $0xd0] sm:$0xff] }
 0x12d   :  { %v552_v26 = vadd.f32 %v520_v20, %v456_v17  ;;  %v568_v27 = vadd.f32 %v536_v22, %v472_v19  ;;  %v494_v19 = vld [vmem:[%s1273_s2 + $0x58] sm:$0xff]  ;;  %v615_v22 = vld [vmem:[#allocation2] sm:$0xff]  ;;  %v617_v23 = vld [vmem:[#allocation2 + $0x10] sm:$0xff] }
 0x12e   :  { %v322_v28 = vpop.f32.mrb[12].mxu0  ;;  %v402_v30 = vpop.f32.mrb[12].mxu1 }
 0x12f   :  { %585 = vst.msk [vmem:[#allocation2 + $0x28] sm:$0xff] %vm65_vm0, %v552_v26  ;;  %v521_v32 = vmul.f32 %v489_v24, %v322_v28  ;;  %v324_v33 = vpop.f32.mrb[13].mxu0  ;;  %601 = vst.msk [vmem:[#allocation2 + $0xa8] sm:$0xff] %vm65_vm0, %v568_v27  ;;  %v537_v34 = vmul.f32 %v505_v25, %v402_v30  ;;  %v404_v35 = vpop.f32.mrb[13].mxu1  ;;  %v510_v24 = vld [vmem:[%s1273_s2 + $0xd8] sm:$0xff]  ;;  %v648_v25 = vsel %vm65_vm0, %v616_v12, 0.0 }
 0x130   :  { %v618_v28 = vld [vmem:[#allocation2 + $0x18] sm:$0xff]  ;;  %v647_v33 = vsel %vm65_vm0, %v615_v22, 0.0 }
 0x131   :  { %v553_v38 = vadd.f32 %v521_v32, %v457_v29  ;;  %v569_v39 = vadd.f32 %v537_v34, %v473_v31  ;;  %v462_v30 = vld [vmem:[#allocation2 + $0x58] sm:$0xff]  ;;  %v650_v34 = vsel %vm65_vm0, %v617_v23, 0.0  ;;  %v481_v23 = vld [vmem:[#allocation2 + $0xf0] sm:$0xff] }
 0x132   :  { %v327_v40 = vpop.f32.mrb[14].mxu0  ;;  %v407_v42 = vpop.f32.mrb[14].mxu1  ;;  %v478_v32 = vld [vmem:[#allocation2 + $0xd8] sm:$0xff] }
 0x133   :  { %586 = vst.msk [vmem:[#allocation2 + $0x30] sm:$0xff] %vm65_vm0, %v553_v38  ;;  %v522_v44 = vmul.f32 %v490_v36, %v327_v40  ;;  %v329_v45 = vpop.f32.mrb[15].mxu0  ;;  %602 = vst.msk [vmem:[#allocation2 + $0xb0] sm:$0xff] %vm65_vm0, %v569_v39  ;;  %v538_v46 = vmul.f32 %v506_v37, %v407_v42  ;;  %v409_v47 = vpop.f32.mrb[15].mxu1  ;;  %v649_v39 = vadd.f32 %v648_v25, %v647_v33  ;;  %v619_v40 = vld [vmem:[#allocation2 + $0x20] sm:$0xff] }
 0x134   :  { %v511_v42 = vld [vmem:[%s1273_s2 + $0xe0] sm:$0xff] }
 0x135   :  { %v554_v50 = vadd.f32 %v522_v44, %v458_v41  ;;  %v570_v51 = vadd.f32 %v538_v46, %v474_v43  ;;  %v495_v41 = vld [vmem:[%s1273_s2 + $0x60] sm:$0xff]  ;;  %v652_v43 = vsel %vm65_vm0, %v618_v28, 0.0  ;;  %v651_v46 = vadd.f32 %v650_v34, %v649_v39  ;;  %v466_v39 = vld [vmem:[#allocation2 + $0x78] sm:$0xff] }
 0x136   :  { %v332_v52 = vpop.f32.mrb[16].mxu0  ;;  %v412_v54 = vpop.f32.mrb[16].mxu1  ;;  %v620_v47 = vld [vmem:[#allocation2 + $0x28] sm:$0xff] }
 0x137   :  { %587 = vst.msk [vmem:[#allocation2 + $0x38] sm:$0xff] %vm65_vm0, %v554_v50  ;;  %v523_v56 = vmul.f32 %v491_v48, %v332_v52  ;;  %v334_v57 = vpop.f32.mrb[17].mxu0  ;;  %603 = vst.msk [vmem:[#allocation2 + $0xb8] sm:$0xff] %vm65_vm0, %v570_v51  ;;  %v539_v58 = vmul.f32 %v507_v49, %v412_v54  ;;  %v414_v59 = vpop.f32.mrb[17].mxu1  ;;  %v463_v49 = vld [vmem:[#allocation2 + $0x60] sm:$0xff]  ;;  %v654_v52 = vsel %vm65_vm0, %v619_v40, 0.0 }
 0x138   :  { %v479_v51 = vld [vmem:[#allocation2 + $0xe0] sm:$0xff]  ;;  %v653_v57 = vadd.f32 %v652_v43, %v651_v46  ;;  %v496_v59 = vld [vmem:[%s1273_s2 + $0x68] sm:$0xff] }
 0x139   :  { %v555_v62 = vadd.f32 %v523_v56, %v459_v53  ;;  %v571_v63 = vadd.f32 %v539_v58, %v475_v55 }
 0x13a   :  { %v337_v0 = vpop.f32.mrb[18].mxu0  ;;  %v417_v2 = vpop.f32.mrb[18].mxu1  ;;  %v621_v58 = vld [vmem:[#allocation2 + $0x30] sm:$0xff] }
 0x13b   :  { %588 = vst.msk [vmem:[#allocation2 + $0x40] sm:$0xff] %vm65_vm0, %v555_v62  ;;  %v524_v4 = vmul.f32 %v492_v60, %v337_v0  ;;  %v339_v5 = vpop.f32.mrb[19].mxu0  ;;  %604 = vst.msk [vmem:[#allocation2 + $0xc0] sm:$0xff] %vm65_vm0, %v571_v63  ;;  %v540_v6 = vmul.f32 %v508_v61, %v417_v2  ;;  %v419_v7 = vpop.f32.mrb[19].mxu1  ;;  %v512_v60 = vld [vmem:[%s1273_s2 + $0xe8] sm:$0xff]  ;;  %v656_v61 = vsel %vm65_vm0, %v620_v47, 0.0  ;;  %v655_v0 = vadd.f32 %v654_v52, %v653_v57 }
 0x13c   :  { %v480_v5 = vld [vmem:[#allocation2 + $0xe8] sm:$0xff] }
 0x13d   :  { %v556_v10 = vadd.f32 %v524_v4, %v460_v1  ;;  %v572_v11 = vadd.f32 %v540_v6, %v476_v3  ;;  %v464_v3 = vld [vmem:[#allocation2 + $0x68] sm:$0xff]  ;;  %v658_v6 = vsel %vm65_vm0, %v621_v58, 0.0 }
 0x13e   :  { %v342_v13 = vpop.f32.mrb[20].mxu0  ;;  %v422_v15 = vpop.f32.mrb[20].mxu1  ;;  %v622_v1 = vld [vmem:[#allocation2 + $0x38] sm:$0xff] }
 0x13f   :  { %589 = vst.msk [vmem:[#allocation2 + $0x48] sm:$0xff] %vm65_vm0, %v556_v10  ;;  %v525_v17 = vmul.f32 %v493_v8, %v342_v13  ;;  %v344_v18 = vpop.f32.mrb[21].mxu0  ;;  %605 = vst.msk [vmem:[#allocation2 + $0xc8] sm:$0xff] %vm65_vm0, %v572_v11  ;;  %v541_v20 = vmul.f32 %v509_v9, %v422_v15  ;;  %v424_v21 = vpop.f32.mrb[21].mxu1  ;;  %v657_v11 = vadd.f32 %v656_v61, %v655_v0  ;;  %v497_v13 = vld [vmem:[%s1273_s2 + $0x70] sm:$0xff]  ;;  %v660_v15 = vsel %vm65_vm0, %v622_v1, 0.0 }
 0x140   :  { %v465_v21 = vld [vmem:[#allocation2 + $0x70] sm:$0xff]  ;;  %v632_v1 = vld [vmem:[#allocation2 + $0x88] sm:$0xff] }
 0x141   :  { %v557_v26 = vadd.f32 %v525_v17, %v461_v14  ;;  %v573_v27 = vadd.f32 %v541_v20, %v477_v16  ;;  %v513_v14 = vld [vmem:[%s1273_s2 + $0xf0] sm:$0xff]  ;;  %v659_v18 = vadd.f32 %v658_v6, %v657_v11  ;;  %v680_v6 = vsel %vm65_vm0, %v632_v1, 0.0 }
 0x142   :  { %v347_v29 = vpop.f32.mrb[22].mxu0  ;;  %v427_v31 = vpop.f32.mrb[22].mxu1  ;;  %v623_v12 = vld [vmem:[#allocation2 + $0x40] sm:$0xff] }
 0x143   :  { %590 = vst.msk [vmem:[#allocation2 + $0x50] sm:$0xff] %vm65_vm0, %v557_v26  ;;  %v526_v35 = vmul.f32 %v494_v19, %v347_v29  ;;  %v349_v36 = vpop.f32.mrb[23].mxu0  ;;  %606 = vst.msk [vmem:[#allocation2 + $0xd0] sm:$0xff] %vm65_vm0, %v573_v27  ;;  %v542_v37 = vmul.f32 %v510_v24, %v427_v31  ;;  %v429_v38 = vpop.f32.mrb[23].mxu1  ;;  %v662_v24 = vsel %vm65_vm0, %v623_v12, 0.0  ;;  %v661_v29 = vadd.f32 %v660_v15, %v659_v18  ;;  %v498_v31 = vld [vmem:[%s1273_s2 + $0x78] sm:$0xff] }
 0x145   :  { %v558_v44 = vadd.f32 %v526_v35, %v462_v30  ;;  %v574_v45 = vadd.f32 %v542_v37, %v478_v32  ;;  %v514_v32 = vld [vmem:[%s1273_s2 + $0xf8] sm:$0xff]  ;;  %v663_v36 = vadd.f32 %v662_v24, %v661_v29 }
 0x146   :  { %v352_v48 = vpop.f32.mrb[24].mxu0  ;;  %v432_v50 = vpop.f32.mrb[24].mxu1  ;;  %v624_v19 = vld [vmem:[#allocation2 + $0x48] sm:$0xff] }
 0x147   :  { %591 = vst.msk [vmem:[#allocation2 + $0x58] sm:$0xff] %vm65_vm0, %v558_v44  ;;  %v527_v53 = vmul.f32 %v495_v41, %v352_v48  ;;  %v354_v54 = vpop.f32.mrb[25].mxu0  ;;  %607 = vst.msk [vmem:[#allocation2 + $0xd8] sm:$0xff] %vm65_vm0, %v574_v45  ;;  %v543_v55 = vmul.f32 %v511_v42, %v432_v50  ;;  %v434_v56 = vpop.f32.mrb[25].mxu1  ;;  %v664_v33 = vsel %vm65_vm0, %v624_v19, 0.0  ;;  %v482_v41 = vld [vmem:[#allocation2 + $0xf8] sm:$0xff] }
 0x148   :  { %v665_v47 = vadd.f32 %v664_v33, %v663_v36  ;;  %v638_v19 = vld [vmem:[#allocation2 + $0xb8] sm:$0xff] }
 0x149   :  { %v559_v62 = vadd.f32 %v527_v53, %v463_v49  ;;  %v575_v63 = vadd.f32 %v543_v55, %v479_v51  ;;  %v692_v24 = vsel %vm65_vm0, %v638_v19, 0.0 }
 0x14a   :  { %v357_v2 = vpop.f32.mrb[26].mxu0  ;;  %v437_v4 = vpop.f32.mrb[26].mxu1  ;;  %v625_v30 = vld [vmem:[#allocation2 + $0x50] sm:$0xff] }
 0x14b   :  { %592 = vst.msk [vmem:[#allocation2 + $0x60] sm:$0xff] %vm65_vm0, %v559_v62  ;;  %v528_v7 = vmul.f32 %v496_v59, %v357_v2  ;;  %v359_v8 = vpop.f32.mrb[27].mxu0  ;;  %608 = vst.msk [vmem:[#allocation2 + $0xe0] sm:$0xff] %vm65_vm0, %v575_v63  ;;  %v544_v9 = vmul.f32 %v512_v60, %v437_v4  ;;  %v439_v10 = vpop.f32.mrb[27].mxu1  ;;  %v666_v42 = vsel %vm65_vm0, %v625_v30, 0.0  ;;  %v631_v62 = vld [vmem:[#allocation2 + $0x80] sm:$0xff] }
 0x14c   :  { %v667_v52 = vadd.f32 %v666_v42, %v665_v47  ;;  %v633_v4 = vld [vmem:[#allocation2 + $0x90] sm:$0xff]  ;;  %v635_v10 = vld [vmem:[#allocation2 + $0xa0] sm:$0xff] }
 0x14d   :  { %v560_v16 = vadd.f32 %v528_v7, %v464_v3  ;;  %v576_v17 = vadd.f32 %v544_v9, %v480_v5  ;;  %v678_v3 = vsel %vm65_vm0, %v631_v62, 0.0  ;;  %v634_v7 = vld [vmem:[#allocation2 + $0x98] sm:$0xff]  ;;  %v682_v9 = vsel %vm65_vm0, %v633_v4, 0.0 }
 0x14e   :  { %v362_v20 = vpop.f32.mrb[28].mxu0  ;;  %v442_v22 = vpop.f32.mrb[28].mxu1  ;;  %v626_v37 = vld [vmem:[#allocation2 + $0x58] sm:$0xff]  ;;  %v684_v12 = vsel %vm65_vm0, %v634_v7, 0.0  ;;  %v686_v15 = vsel %vm65_vm0, %v635_v10, 0.0 }
 0x14f   :  { %593 = vst.msk [vmem:[#allocation2 + $0x68] sm:$0xff] %vm65_vm0, %v560_v16  ;;  %v529_v25 = vmul.f32 %v497_v13, %v362_v20  ;;  %v364_v26 = vpop.f32.mrb[29].mxu0  ;;  %609 = vst.msk [vmem:[#allocation2 + $0xe8] sm:$0xff] %vm65_vm0, %v576_v17  ;;  %v545_v27 = vmul.f32 %v513_v14, %v442_v22  ;;  %v444_v28 = vpop.f32.mrb[29].mxu1  ;;  %v668_v49 = vsel %vm65_vm0, %v626_v37, 0.0  ;;  %v636_v13 = vld [vmem:[#allocation2 + $0xa8] sm:$0xff] }
 0x150   :  { %v669_v55 = vadd.f32 %v668_v49, %v667_v52  ;;  %v637_v16 = vld [vmem:[#allocation2 + $0xb0] sm:$0xff]  ;;  %v688_v18 = vsel %vm65_vm0, %v636_v13, 0.0  ;;  %v639_v22 = vld [vmem:[#allocation2 + $0xc0] sm:$0xff] }
 0x151   :  { %v561_v34 = vadd.f32 %v529_v25, %v465_v21  ;;  %v577_v35 = vadd.f32 %v545_v27, %v481_v23  ;;  %v690_v21 = vsel %vm65_vm0, %v637_v16, 0.0  ;;  %v640_v25 = vld [vmem:[#allocation2 + $0xc8] sm:$0xff]  ;;  %v694_v27 = vsel %vm65_vm0, %v639_v22, 0.0  ;;  %v641_v28 = vld [vmem:[#allocation2 + $0xd0] sm:$0xff] }
 0x152   :  { %v367_v38 = vpop.f32.mrb[30].mxu0  ;;  %v447_v40 = vpop.f32.mrb[30].mxu1  ;;  %v627_v48 = vld [vmem:[#allocation2 + $0x60] sm:$0xff]  ;;  %v696_v30 = vsel %vm65_vm0, %v640_v25, 0.0  ;;  %v698_v33 = vsel %vm65_vm0, %v641_v28, 0.0 }
 0x153   :  { %594 = vst.msk [vmem:[#allocation2 + $0x70] sm:$0xff] %vm65_vm0, %v561_v34  ;;  %v530_v43 = vmul.f32 %v498_v31, %v367_v38  ;;  %v369_v44 = vpop.f32.mrb[31].mxu0  ;;  %610 = vst.msk [vmem:[#allocation2 + $0xf0] sm:$0xff] %vm65_vm0, %v577_v35  ;;  %v546_v45 = vmul.f32 %v514_v32, %v447_v40  ;;  %v449_v46 = vpop.f32.mrb[31].mxu1  ;;  %v670_v54 = vsel %vm65_vm0, %v627_v48, 0.0  ;;  %v642_v31 = vld [vmem:[#allocation2 + $0xd8] sm:$0xff] }
 0x154   :  { %v671_v58 = vadd.f32 %v670_v54, %v669_v55  ;;  %v643_v34 = vld [vmem:[#allocation2 + $0xe0] sm:$0xff]  ;;  %v700_v36 = vsel %vm65_vm0, %v642_v31, 0.0 }
 0x155   :  { %v562_v50 = vadd.f32 %v530_v43, %v466_v39  ;;  %v578_v51 = vadd.f32 %v546_v45, %v482_v41  ;;  %v702_v39 = vsel %vm65_vm0, %v643_v34, 0.0 }
 0x156   :  { %v628_v53 = vld [vmem:[#allocation2 + $0x68] sm:$0xff] }
 0x157   :  { %595 = vst.msk [vmem:[#allocation2 + $0x78] sm:$0xff] %vm65_vm0, %v562_v50  ;;  %611 = vst.msk [vmem:[#allocation2 + $0xf8] sm:$0xff] %vm65_vm0, %v578_v51  ;;  %v672_v56 = vsel %vm65_vm0, %v628_v53, 0.0  ;;  %v644_v37 = vld [vmem:[#allocation2 + $0xe8] sm:$0xff] }
 0x158   :  { %v673_v60 = vadd.f32 %v672_v56, %v671_v58  ;;  %v704_v43 = vsel %vm65_vm0, %v644_v37, 0.0 }
 0x15a   :  { %v629_v57 = vld [vmem:[#allocation2 + $0x70] sm:$0xff] }
 0x15b   :  { %v674_v59 = vsel %vm65_vm0, %v629_v57, 0.0  ;;  %v645_v40 = vld [vmem:[#allocation2 + $0xf0] sm:$0xff] }
 0x15c   :  { %v675_v63 = vadd.f32 %v674_v59, %v673_v60  ;;  %v706_v45 = vsel %vm65_vm0, %v645_v40, 0.0 }
 0x15e   :  { %v630_v61 = vld [vmem:[#allocation2 + $0x78] sm:$0xff] }
 0x15f   :  { %v676_v0 = vsel %vm65_vm0, %v630_v61, 0.0  ;;  %v646_v41 = vld [vmem:[#allocation2 + $0xf8] sm:$0xff] }
 0x160   :  { %v677_v2 = vadd.f32 %v676_v0, %v675_v63  ;;  %v708_v46 = vsel %vm65_vm0, %v646_v41, 0.0 }
 0x162   :  { %v679_v5 = vadd.f32 %v678_v3, %v677_v2 }
 0x164   :  { %v681_v8 = vadd.f32 %v680_v6, %v679_v5 }
 0x166   :  { %v683_v11 = vadd.f32 %v682_v9, %v681_v8 }
 0x168   :  { %v685_v14 = vadd.f32 %v684_v12, %v683_v11 }
 0x16a   :  { %v687_v17 = vadd.f32 %v686_v15, %v685_v14 }
 0x16c   :  { %v689_v20 = vadd.f32 %v688_v18, %v687_v17 }
 0x16e   :  { %v691_v23 = vadd.f32 %v690_v21, %v689_v20 }
 0x170   :  { %v693_v26 = vadd.f32 %v692_v24, %v691_v23 }
 0x172   :  { %v695_v29 = vadd.f32 %v694_v27, %v693_v26 }
 0x174   :  { %v697_v32 = vadd.f32 %v696_v30, %v695_v29 }
 0x176   :  { %v699_v35 = vadd.f32 %v698_v33, %v697_v32 }
 0x178   :  { %v701_v38 = vadd.f32 %v700_v36, %v699_v35 }
 0x17a   :  { %v703_v42 = vadd.f32 %v702_v39, %v701_v38 }
 0x17c   :  { %v705_v44 = vadd.f32 %v704_v43, %v703_v42 }
 0x17e   :  { %v707_v47 = vadd.f32 %v706_v45, %v705_v44 }
 0x180   :  { %v709_v48 = vadd.f32 %v708_v46, %v707_v47 }
 0x182   :  { %710 = vadd.xlane.f32.xlu0 %v709_v48 }
 0x20f   :  { %v711_v49 = vpop.xlane.xlu0 %710 }
 0x210   :  { %v712_v50 = vrot.slane %v711_v49, 4 }
 0x212   :  { %v713_v51 = vadd.f32 %v712_v50, %v711_v49 }
 0x214   :  { %v714_v52 = vrot.slane %v713_v51, 2 }
 0x216   :  { %v715_v53 = vadd.f32 %v714_v52, %v713_v51 }
 0x218   :  { %v716_v54 = vrot.slane %v715_v53, 1 }
 0x21a   :  { %v717_v55 = vadd.f32 %v716_v54, %v715_v53 }
 0x21c   :  { %818 = vpush %v717_v55 }
 0x24d   :  { %s819_s2 = spop %818 }
 0x24e   :  { %v719_v56 = vstv %s819_s2 }
 0x24f   :  { %721 = vst [vmem:[%s1274_s3] sm:$0xff] %v719_v56 }

</bundles_post_ra>
